<compile_context>
chip_gen: v6e
topology: v6e:2x2x1
jax: 0.10.0
libtpu: 0.0.40
codegen_flags: <defaults>
</compile_context>

<pallas_src>
import jax
import jax.numpy as jnp
from jax.experimental import pallas as pl
from jax.experimental.pallas import tpu as pltpu


def _normalize_kernel(x_ref, scale_ref, bias_ref, o_ref):
    # x_ref:     (tR, tHW) image tile
    # scale_ref: (tR, 1)   per-row 1/std      (broadcast along lanes)
    # bias_ref:  (tR, 1)   per-row -mean/std  (broadcast along lanes)
    x = x_ref[...].astype(jnp.float32)
    o_ref[...] = (x * scale_ref[...] + bias_ref[...]).astype(o_ref.dtype)


def _block_budget_bytes() -> int:
    """Per-generation target bytes for one image block."""
    try:
        kind = jax.devices()[0].device_kind.lower()
    except Exception:  # pragma: no cover - defensive
        kind = ""
    if "v7" in kind:
        # v7x: 64 MiB/TC physical VMEM, ~3.2 TB/s HBM -> bigger blocks pay off.
        return 6 << 20
    if "v5 lite" in kind or "v5e" in kind or "v5litepod" in kind:
        # v5e: keep 4x block (+ small scale/bias) under the 16 MiB default
        # scoped limit even before we raise vmem_limit_bytes.
        return 3 << 20
    return 4 << 20  # v6e / v5p / default


def _pick_tiles(R: int, HW: int, itemsize: int, budget_bytes: int):
    """Pick (row_tile, lane_tile) obeying the (8,128)/full-extent rule with a
    block as close to `budget_bytes` as the array allows."""

    def rdown(x, m):
        return max(m, (x // m) * m)

    # 1) Whole array in a single block (full extent on both axes: always legal).
    if R * HW * itemsize <= budget_bytes:
        return R, HW

    # 2) Full-width row slabs: the block is one contiguous HBM chunk.
    rows_fit = budget_bytes // (HW * itemsize)
    if rows_fit >= 8:
        return rdown(min(rows_fit, R), 8), HW

    # 3) HW alone is wider than the budget: keep the row tile minimal so the
    #    per-row contiguous DMA chunk (tHW * itemsize) stays as long as
    #    possible; accept one masked tail tile instead of hunting divisors.
    tR = R if R < 8 else 8
    lanes_fit = budget_bytes // (tR * itemsize)
    tHW = HW if lanes_fit >= HW else rdown(min(lanes_fit, HW), 128)
    return tR, tHW


def normalization_forward(img, mean, std, out_dtype=None, block_budget_bytes=None):
    """img: (N, C, H, W); mean, std: (C,) — returns (img - mean) / std.

    out_dtype: optional store dtype (e.g. jnp.bfloat16 for a bf16 consumer);
    defaults to img.dtype for float inputs and float32 for integer inputs.
    """
    N, C, H, W = img.shape
    R, HW = N * C, H * W

    if out_dtype is None:
        out_dtype = (
            img.dtype if jnp.issubdtype(img.dtype, jnp.floating) else jnp.float32
        )
    out_dtype = jnp.dtype(out_dtype)
    in_item = jnp.dtype(img.dtype).itemsize
    out_item = out_dtype.itemsize

    x2d = img.reshape(R, HW)

    # Affine form: out = x * (1/std) + (-mean/std), computed in f32.
    # (Not bit-identical to (x-mean)/std — ~1 ulp from the reciprocal.)
    scale = 1.0 / std.astype(jnp.float32)          # (C,)
    bias = -mean.astype(jnp.float32) * scale       # (C,)
    # Row r corresponds to (n, c) with c = r % C.
    scale_rows = jnp.tile(scale, N).reshape(R, 1)
    bias_rows = jnp.tile(bias, N).reshape(R, 1)

    budget = _block_budget_bytes() if block_budget_bytes is None else block_budget_bytes
    tR, tHW = _pick_tiles(R, HW, max(in_item, out_item), budget)
    grid = (pl.cdiv(R, tR), pl.cdiv(HW, tHW))

    # In-flight VMEM: input + output double-buffered, plus the lane-padded
    # (tR, 128) scale/bias buffers.  Raise the scoped limit with headroom so
    # the v5e 16 MiB default never degrades buffering.
    in_flight = 2 * tR * tHW * (in_item + out_item) + 4 * tR * 128 * 4
    vmem_limit = int(min(60 << 20, max(32 << 20, in_flight + in_flight // 2)))

    cost = pl.CostEstimate(
        flops=2 * R * HW,
        transcendentals=0,
        bytes_accessed=R * HW * (in_item + out_item) + 2 * R * 4,
    )

    out2d = pl.pallas_call(
        _normalize_kernel,
        out_shape=jax.ShapeDtypeStruct((R, HW), out_dtype),
        grid=grid,
        in_specs=[
            pl.BlockSpec((tR, tHW), lambda i, j: (i, j)),   # image tile
            pl.BlockSpec((tR, 1), lambda i, j: (i, 0)),     # scale: row axis only
            pl.BlockSpec((tR, 1), lambda i, j: (i, 0)),     # bias:  row axis only
        ],
        out_specs=pl.BlockSpec((tR, tHW), lambda i, j: (i, j)),
        compiler_params=pltpu.CompilerParams(
            dimension_semantics=("parallel", "parallel"),
            vmem_limit_bytes=vmem_limit,
        ),
        cost_estimate=cost,
    )(x2d, scale_rows, bias_rows)

    return out2d.reshape(N, C, H, W)


if __name__ == "__main__":
    # ImageNet / VGG19 normalization constants (C = 3).
    mean = jnp.array([0.485, 0.456, 0.406], dtype=jnp.float32)
    std = jnp.array([0.229, 0.224, 0.225], dtype=jnp.float32)

    key = jax.random.PRNGKey(0)

    # Primary small example consistent with the module's usage.
    N, C, H, W = 2, 3, 16, 16
    img = jax.random.uniform(key, (N, C, H, W), dtype=jnp.float32)

    out = normalization_forward(img, mean, std)
    out = jax.block_until_ready(out)

    ref = (img - mean.reshape(-1, 1, 1)) / std.reshape(-1, 1, 1)
    assert out.shape == img.shape and out.dtype == img.dtype
    assert jnp.allclose(out, ref, atol=1e-5, rtol=1e-5)

    # Larger image, single-block path (4x3x64x64 f32 = 192 KiB).
    img2 = jax.random.uniform(jax.random.PRNGKey(0), (4, 3, 64, 64), dtype=jnp.float32)
    out2 = jax.block_until_ready(normalization_forward(img2, mean, std))
    ref2 = (img2 - mean.reshape(-1, 1, 1)) / std.reshape(-1, 1, 1)
    assert jnp.allclose(out2, ref2, atol=1e-5, rtol=1e-5)

    # Same image with a tiny artificial budget to exercise the multi-block
    # grid + masked-tail path of the tile picker (tR=8 over R=12, lane tiles).
    out3 = jax.block_until_ready(
        normalization_forward(img2, mean, std, block_budget_bytes=64 * 1024)
    )
    assert jnp.allclose(out3, ref2, atol=1e-5, rtol=1e-5)

    # Optional bf16 store (halves write bandwidth for bf16 consumers).
    out4 = jax.block_until_ready(
        normalization_forward(img2, mean, std, out_dtype=jnp.bfloat16)
    )
    assert out4.dtype == jnp.bfloat16
    assert jnp.allclose(out4.astype(jnp.float32), ref2, atol=3e-2, rtol=3e-2)

    print("KERNEL_OK")
</pallas_src>

<mosaic_0001>
module attributes {stable_mosaic.version = 11 : i64} {
  func.func @_normalize_kernel(%arg0: i32, %arg1: i32, %arg2: memref<6x256xf32, #tpu.memory_space<vmem>>, %arg3: memref<6x1xf32, #tpu.memory_space<vmem>>, %arg4: memref<6x1xf32, #tpu.memory_space<vmem>>, %arg5: memref<6x256xf32, #tpu.memory_space<vmem>>) attributes {dimension_semantics = [#tpu.dimension_semantics<parallel>, #tpu.dimension_semantics<parallel>], iteration_bounds = array<i64: 1, 1>, scalar_prefetch = 0 : i64, scratch_operands = 0 : i64, tpu.core_type = #tpu.core_type<tc>, window_params = [{transform_indices = @transform_0, window_bounds = array<i64: 6, 256>}, {transform_indices = @transform_1, window_bounds = array<i64: 6, 1>}, {transform_indices = @transform_2, window_bounds = array<i64: 6, 1>}, {transform_indices = @transform_3, window_bounds = array<i64: 6, 256>}]} {
    %c0 = arith.constant 0 : index
    %c0_0 = arith.constant 0 : index
    %0 = vector.load %arg2[%c0, %c0_0] : memref<6x256xf32, #tpu.memory_space<vmem>>, vector<6x256xf32>
    %c0_1 = arith.constant 0 : index
    %c0_2 = arith.constant 0 : index
    %1 = vector.load %arg3[%c0_1, %c0_2] : memref<6x1xf32, #tpu.memory_space<vmem>>, vector<6x1xf32>
    %2 = vector.broadcast %1 : vector<6x1xf32> to vector<6x256xf32>
    %3 = arith.mulf %0, %2 : vector<6x256xf32>
    %c0_3 = arith.constant 0 : index
    %c0_4 = arith.constant 0 : index
    %4 = vector.load %arg4[%c0_3, %c0_4] : memref<6x1xf32, #tpu.memory_space<vmem>>, vector<6x1xf32>
    %5 = vector.broadcast %4 : vector<6x1xf32> to vector<6x256xf32>
    %6 = arith.addf %3, %5 : vector<6x256xf32>
    %c0_5 = arith.constant 0 : index
    %c0_6 = arith.constant 0 : index
    %7 = vector.load %arg5[%c0_5, %c0_6] : memref<6x256xf32, #tpu.memory_space<vmem>>, vector<6x256xf32>
    tpu.vector_store %arg5[%c0_5, %c0_6], %6 {strides = array<i32>} : memref<6x256xf32, #tpu.memory_space<vmem>>, vector<6x256xf32>,
    return
  }
  func.func @transform_0(%arg0: i32, %arg1: i32) -> (i32, i32) {
    %c0_i32 = arith.constant 0 : i32
    return %arg0, %arg1 : i32, i32
  }
  func.func @transform_1(%arg0: i32, %arg1: i32) -> (i32, i32) {
    %c0_i32 = arith.constant 0 : i32
    %c0_i32_0 = arith.constant 0 : i32
    return %arg0, %c0_i32 : i32, i32
  }
  func.func @transform_2(%arg0: i32, %arg1: i32) -> (i32, i32) {
    %c0_i32 = arith.constant 0 : i32
    %c0_i32_0 = arith.constant 0 : i32
    return %arg0, %c0_i32 : i32, i32
  }
  func.func @transform_3(%arg0: i32, %arg1: i32) -> (i32, i32) {
    %c0_i32 = arith.constant 0 : i32
    return %arg0, %arg1 : i32, i32
  }
}

</mosaic_0001>

<bundles_post_ra>
// kernel: tpu_custom_call.1
= control target key start
LH: loop header
LB: loop body
LE: loop exit
PB: predicated region body
PF: predicated region fallthrough
CT: control target
= control target key end

     0   :  { %v74_v1 = vmov 0   ;;  %s111_s0 = inlined_call_operand.vmem [shape: f32[6,256], index: 0, kind: input, shape index: {}]   ;;  %s112_s1 = inlined_call_operand.vmem [shape: f32[6,1], index: 1, kind: input, shape index: {}]   ;;  %s113_s2 = inlined_call_operand.vmem [shape: f32[6,1], index: 2, kind: input, shape index: {}]   ;;  %s114_s3 = inlined_call_operand.hbm [shape: f32[6,256], index: 3, kind: output, shape index: {}]  }
   0x1   :  { %v17_v0 = vld [vmem:[%s112_s1] sm:$0x3f]  ;;  %51 = vset.pattern.permute.xlu0 %v74_v1 }
   0x2   :  { %8 = vsyncpa [#allocation3], 0  ;;  %20 = vperm.xlu0 %51, %v17_v0   ;;  %v25_v2 = vld [vmem:[%s113_s2] sm:$0x3f]  ;;  %v16_v5 = vld [vmem:[%s111_s0 + $0x8] sm:$0x3f] }
   0x3   :  { %v15_v4 = vld [vmem:[%s111_s0] sm:$0x3f]  ;;  %s75_s20 = smov [#allocation2]  }
   0x4   :  { %s41_s1 = sshll.u32 %s75_s20, 4  ;;  %s42_s1 = int_to_ptr.vmem [resolvable:$true] %s41_s1 }
   0x5   :  { %s52_s2 = scalar_lea.vmem %s42_s1, 256  ;;  %p57_p1 = scmp.lt.s32.totalorder %s42_s1, %s42_s1 }
   0x6   :  { %28 = vperm.xlu0 %51, %v25_v2   ;;  %p53_p0 = scmp.ne.s32.totalorder %s42_s1, %s52_s2  ;;  %p58_p2 = scmp.lt.s32.totalorder %s52_s2, %s52_s2 }
   0x8   :  { %p59_p3 = por %p58_p2, %p57_p1 }
   0xa   :  { %p60_p4 = pnand %p59_p3, %p53_p0 }
  0x7d   :  { %v21_v3 = vpop.permute.xlu0 %20 }
  0x7e   :  { %v23_v6 = vmul.f32 %v21_v3, %v15_v4  ;;  %v24_v7 = vmul.f32 %v21_v3, %v16_v5 }
  0x81   :  { %v29_v8 = vpop.permute.xlu0 %28 }
  0x82   :  { %v31_v9 = vadd.f32 %v29_v8, %v23_v6  ;;  %v32_v10 = vadd.f32 %v29_v8, %v24_v7 }
  0x84   :  { %33 = vst [vmem:[#allocation2] sm:$0x3f] %v31_v9  ;;  %34 = vst [vmem:[#allocation2 + $0x8] sm:$0x3f] %v32_v10 }
  0x85   :  { %63 = shalt.err (!%p60_p4)
}
  0x86   :  { %44 = dma.vmem_to_hbm [thread:$0]  %s42_s1, 256, %s114_s3, [#allocation3]  }
  0x87   :  { %72 = dma.done.wait [#allocation3], 256  }
  0x88   :  { %73 = vsyncadd [#allocation3], 4294967040 }
  0x89   :  { %48 = vsyncpa [#allocation3], 1 }

</bundles_post_ra>
